<compile_context>
chip_gen: v7x
topology: tpu7x:2x2x1
jax: 0.10.0
libtpu: 0.0.40
codegen_flags: <defaults>
</compile_context>

<pallas_src>
import jax
import jax.numpy as jnp
from jax.experimental import pallas as pl
from jax.experimental.pallas import tpu as pltpu

LANE = 128
SUBLANE = 8  # f32 native sublane tile


def _round_up(n, m):
    return (n + m - 1) // m * m


def _tensorcores_per_chip():
    """Best-effort TensorCore count for the row-tiling policy (perf only)."""
    try:
        kind = jax.devices()[0].device_kind.lower()
    except Exception:
        return 1
    if "lite" in kind or "v5e" in kind or "v6e" in kind:
        return 1  # v5e / v6e: single TensorCore per chip
    if "v7" in kind or "7x" in kind:
        return 2  # v7x: 2 TensorCores per chip
    return 2      # v4 / v5p style megacore chips: grid axes shard across 2 cores


def dqn_kernel(x_ref, w1_ref, b1_ref, w2_ref, b2_ref, w3_ref, b3_ref, o_ref):
    # x tile: (TB, band) f32. Weights pre-transposed to [in, out] (hidden dims
    # zero-padded to 128 lanes), f32. Biases (1, out). MXU accumulates in f32.
    x = x_ref[...]

    h1 = jnp.dot(x, w1_ref[...], preferred_element_type=jnp.float32) + b1_ref[...]
    h1 = jnp.maximum(h1, 0.0)

    h2 = jnp.dot(h1, w2_ref[...], preferred_element_type=jnp.float32) + b2_ref[...]
    h2 = jnp.maximum(h2, 0.0)

    out = jnp.dot(h2, w3_ref[...], preferred_element_type=jnp.float32) + b3_ref[...]
    o_ref[...] = out.astype(o_ref.dtype)


def init_dqn_params(key, band):
    """PyTorch-convention params: weights [out, in] ~ U(-0.1, 0.1); biases keep
    the nn.Linear default U(-1/sqrt(fan_in), 1/sqrt(fan_in))."""
    hidden = 2 * band
    keys = jax.random.split(key, 6)

    def winit(k, out_f, in_f):
        return jax.random.uniform(k, (out_f, in_f), jnp.float32, -0.1, 0.1)

    def binit(k, out_f, in_f):
        bound = 1.0 / jnp.sqrt(jnp.float32(in_f))
        return jax.random.uniform(k, (out_f,), jnp.float32, -bound, bound)

    return {
        "fc1": (winit(keys[0], hidden, band), binit(keys[1], hidden, band)),
        "fc2": (winit(keys[2], hidden, hidden), binit(keys[3], hidden, hidden)),
        "fc3": (winit(keys[4], band, hidden), binit(keys[5], band, hidden)),
    }


def prepare_params(params, band):
    """One-time prep (off the per-call path): transpose weights to [in, out] and
    zero-pad only the *hidden* dims to 128-lane multiples. Padding is exact:
    padded hidden columns get zero weights + zero bias (ReLU(0)=0), and padded
    hidden rows multiply zero activations. Everything stays f32."""
    hidden = 2 * band
    hid_p = _round_up(hidden, LANE)
    pad_h = hid_p - hidden

    (w1, b1), (w2, b2), (w3, b3) = params["fc1"], params["fc2"], params["fc3"]

    return {
        "w1": jnp.pad(w1.T, ((0, 0), (0, pad_h))).astype(jnp.float32),      # (band,  hid_p)
        "b1": jnp.pad(b1, (0, pad_h)).reshape(1, hid_p).astype(jnp.float32),
        "w2": jnp.pad(w2.T, ((0, pad_h), (0, pad_h))).astype(jnp.float32),  # (hid_p, hid_p)
        "b2": jnp.pad(b2, (0, pad_h)).reshape(1, hid_p).astype(jnp.float32),
        "w3": jnp.pad(w3.T, ((0, pad_h), (0, 0))).astype(jnp.float32),      # (hid_p, band)
        "b3": b3.reshape(1, band).astype(jnp.float32),
    }


@jax.jit
def dqn_forward(x, prep):
    """x: [batch, band] float32. prep: output of prepare_params."""
    batch, band = x.shape
    band_w, hid_p = prep["w1"].shape
    assert band_w == band, (band_w, band)

    # Generation-aware row tiling: one big tile on single-TC chips (each extra
    # grid step costs ~0.35 us, comparable to the whole per-tile compute here);
    # ~one tile per core on dual-TC chips. Cap TB so huge batches still stream.
    n_cores = _tensorcores_per_chip()
    batch_p = _round_up(batch, SUBLANE)
    if n_cores > 1 and batch_p > SUBLANE:
        tb = _round_up(pl.cdiv(batch_p, n_cores), SUBLANE)
    else:
        tb = batch_p
    tb = min(tb, 1024)
    batch_p = _round_up(batch_p, tb)
    n_tiles = batch_p // tb

    if batch_p != batch:  # row padding only (zeros), no dtype change, no lane pad
        x = jnp.pad(x, ((0, batch_p - batch), (0, 0)))

    row_spec = pl.BlockSpec((tb, band), lambda i: (i, 0))
    resident = lambda shape: pl.BlockSpec(shape, lambda i: (0, 0))  # VMEM-resident

    flops = 2 * batch_p * (band * hid_p + hid_p * hid_p + hid_p * band)
    bytes_accessed = 4 * (
        2 * batch_p * band                                   # x in + out
        + band * hid_p + hid_p * hid_p + hid_p * band        # weights
        + 2 * hid_p + band                                   # biases
    )

    out_p = pl.pallas_call(
        dqn_kernel,
        out_shape=jax.ShapeDtypeStruct((batch_p, band), jnp.float32),
        grid=(n_tiles,),
        in_specs=[
            row_spec,                       # x tiles (streamed)
            resident((band, hid_p)),        # w1^T
            resident((1, hid_p)),           # b1
            resident((hid_p, hid_p)),       # w2^T
            resident((1, hid_p)),           # b2
            resident((hid_p, band)),        # w3^T
            resident((1, band)),            # b3
        ],
        out_specs=row_spec,
        compiler_params=pltpu.CompilerParams(
            dimension_semantics=("parallel",),
            vmem_limit_bytes=32 * 1024 * 1024,
        ),
        cost_estimate=pl.CostEstimate(
            flops=flops, transcendentals=0, bytes_accessed=bytes_accessed
        ),
    )(x, prep["w1"], prep["b1"], prep["w2"], prep["b2"], prep["w3"], prep["b3"])

    return out_p if batch_p == batch else out_p[:batch]


def dqn_reference(x, params):
    (w1, b1), (w2, b2), (w3, b3) = params["fc1"], params["fc2"], params["fc3"]
    h = jnp.maximum(x @ w1.T + b1, 0.0)
    h = jnp.maximum(h @ w2.T + b2, 0.0)
    return h @ w3.T + b3


if __name__ == "__main__":
    band = 32    # DQN(band): fc1 band->2*band, fc2 2*band->2*band, fc3 2*band->band
    batch = 64   # small stack of states

    key = jax.random.PRNGKey(0)
    kx, kp = jax.random.split(key)
    x = jax.random.normal(kx, (batch, band), jnp.float32)

    params = init_dqn_params(kp, band)
    prep = prepare_params(params, band)   # one-time: transpose / pad hidden dims

    out = jax.block_until_ready(dqn_forward(x, prep))
    ref = dqn_reference(x, params)

    assert out.shape == (batch, band), out.shape
    max_err = float(jnp.max(jnp.abs(out - ref)))
    assert max_err < 2e-2, f"mismatch vs reference, max abs err = {max_err}"

    print("KERNEL_OK")
</pallas_src>

<mosaic_0001>
module attributes {stable_mosaic.version = 11 : i64} {
  func.func @dqn_kernel(%arg0: i32, %arg1: memref<32x32xf32, #tpu.memory_space<vmem>>, %arg2: memref<32x128xf32, #tpu.memory_space<vmem>>, %arg3: memref<1x128xf32, #tpu.memory_space<vmem>>, %arg4: memref<128x128xf32, #tpu.memory_space<vmem>>, %arg5: memref<1x128xf32, #tpu.memory_space<vmem>>, %arg6: memref<128x32xf32, #tpu.memory_space<vmem>>, %arg7: memref<1x32xf32, #tpu.memory_space<vmem>>, %arg8: memref<32x32xf32, #tpu.memory_space<vmem>>) attributes {dimension_semantics = [#tpu.dimension_semantics<parallel>], iteration_bounds = array<i64: 2>, scalar_prefetch = 0 : i64, scratch_operands = 0 : i64, tpu.core_type = #tpu.core_type<tc>, window_params = [{transform_indices = @transform_0, window_bounds = array<i64: 32, 32>}, {pipeline_mode = #tpu.pipeline_mode<synchronous>, transform_indices = @transform_1, window_bounds = array<i64: 32, 128>}, {pipeline_mode = #tpu.pipeline_mode<synchronous>, transform_indices = @transform_2, window_bounds = array<i64: 1, 128>}, {pipeline_mode = #tpu.pipeline_mode<synchronous>, transform_indices = @transform_3, window_bounds = array<i64: 128, 128>}, {pipeline_mode = #tpu.pipeline_mode<synchronous>, transform_indices = @transform_4, window_bounds = array<i64: 1, 128>}, {pipeline_mode = #tpu.pipeline_mode<synchronous>, transform_indices = @transform_5, window_bounds = array<i64: 128, 32>}, {pipeline_mode = #tpu.pipeline_mode<synchronous>, transform_indices = @transform_6, window_bounds = array<i64: 1, 32>}, {transform_indices = @transform_7, window_bounds = array<i64: 32, 32>}]} {
    %c0 = arith.constant 0 : index
    %c0_0 = arith.constant 0 : index
    %0 = vector.load %arg1[%c0, %c0_0] : memref<32x32xf32, #tpu.memory_space<vmem>>, vector<32x32xf32>
    %c0_1 = arith.constant 0 : index
    %c0_2 = arith.constant 0 : index
    %1 = vector.load %arg2[%c0_1, %c0_2] : memref<32x128xf32, #tpu.memory_space<vmem>>, vector<32x128xf32>
    %cst = arith.constant dense<0.000000e+00> : vector<32x128xf32>
    %2 = tpu.matmul %0, %1, %cst {dimension_numbers = #tpu.dot_dimension_numbers<[1], [0], [0], [1], [0, 0, 1, 1], [], []>} : vector<32x32xf32>, vector<32x128xf32>, vector<32x128xf32> -> vector<32x128xf32>
    %c0_3 = arith.constant 0 : index
    %c0_4 = arith.constant 0 : index
    %3 = vector.load %arg3[%c0_3, %c0_4] : memref<1x128xf32, #tpu.memory_space<vmem>>, vector<1x128xf32>
    %4 = vector.broadcast %3 : vector<1x128xf32> to vector<32x128xf32>
    %5 = arith.addf %2, %4 : vector<32x128xf32>
    %cst_5 = arith.constant 0.000000e+00 : f32
    %6 = vector.broadcast %cst_5 : f32 to vector<32x128xf32>
    %7 = arith.maximumf %5, %6 : vector<32x128xf32>
    %c0_6 = arith.constant 0 : index
    %c0_7 = arith.constant 0 : index
    %8 = vector.load %arg4[%c0_6, %c0_7] : memref<128x128xf32, #tpu.memory_space<vmem>>, vector<128x128xf32>
    %cst_8 = arith.constant dense<0.000000e+00> : vector<32x128xf32>
    %9 = tpu.matmul %7, %8, %cst_8 {dimension_numbers = #tpu.dot_dimension_numbers<[1], [0], [0], [1], [0, 0, 1, 1], [], []>} : vector<32x128xf32>, vector<128x128xf32>, vector<32x128xf32> -> vector<32x128xf32>
    %c0_9 = arith.constant 0 : index
    %c0_10 = arith.constant 0 : index
    %10 = vector.load %arg5[%c0_9, %c0_10] : memref<1x128xf32, #tpu.memory_space<vmem>>, vector<1x128xf32>
    %11 = vector.broadcast %10 : vector<1x128xf32> to vector<32x128xf32>
    %12 = arith.addf %9, %11 : vector<32x128xf32>
    %cst_11 = arith.constant 0.000000e+00 : f32
    %13 = vector.broadcast %cst_11 : f32 to vector<32x128xf32>
    %14 = arith.maximumf %12, %13 : vector<32x128xf32>
    %c0_12 = arith.constant 0 : index
    %c0_13 = arith.constant 0 : index
    %15 = vector.load %arg6[%c0_12, %c0_13] : memref<128x32xf32, #tpu.memory_space<vmem>>, vector<128x32xf32>
    %cst_14 = arith.constant dense<0.000000e+00> : vector<32x32xf32>
    %16 = tpu.matmul %14, %15, %cst_14 {dimension_numbers = #tpu.dot_dimension_numbers<[1], [0], [0], [1], [0, 0, 1, 1], [], []>} : vector<32x128xf32>, vector<128x32xf32>, vector<32x32xf32> -> vector<32x32xf32>
    %c0_15 = arith.constant 0 : index
    %c0_16 = arith.constant 0 : index
    %17 = vector.load %arg7[%c0_15, %c0_16] : memref<1x32xf32, #tpu.memory_space<vmem>>, vector<1x32xf32>
    %18 = vector.broadcast %17 : vector<1x32xf32> to vector<32x32xf32>
    %19 = arith.addf %16, %18 : vector<32x32xf32>
    %c0_17 = arith.constant 0 : index
    %c0_18 = arith.constant 0 : index
    %20 = vector.load %arg8[%c0_17, %c0_18] : memref<32x32xf32, #tpu.memory_space<vmem>>, vector<32x32xf32>
    tpu.vector_store %arg8[%c0_17, %c0_18], %19 {strides = array<i32>} : memref<32x32xf32, #tpu.memory_space<vmem>>, vector<32x32xf32>,
    return
  }
  func.func @transform_0(%arg0: i32) -> (i32, i32) {
    %c0_i32 = arith.constant 0 : i32
    %c0_i32_0 = arith.constant 0 : i32
    return %arg0, %c0_i32 : i32, i32
  }
  func.func @transform_1(%arg0: i32) -> (i32, i32) {
    %c0_i32 = arith.constant 0 : i32
    %c0_i32_0 = arith.constant 0 : i32
    %c0_i32_1 = arith.constant 0 : i32
    return %c0_i32, %c0_i32_0 : i32, i32
  }
  func.func @transform_2(%arg0: i32) -> (i32, i32) {
    %c0_i32 = arith.constant 0 : i32
    %c0_i32_0 = arith.constant 0 : i32
    %c0_i32_1 = arith.constant 0 : i32
    return %c0_i32, %c0_i32_0 : i32, i32
  }
  func.func @transform_3(%arg0: i32) -> (i32, i32) {
    %c0_i32 = arith.constant 0 : i32
    %c0_i32_0 = arith.constant 0 : i32
    %c0_i32_1 = arith.constant 0 : i32
    return %c0_i32, %c0_i32_0 : i32, i32
  }
  func.func @transform_4(%arg0: i32) -> (i32, i32) {
    %c0_i32 = arith.constant 0 : i32
    %c0_i32_0 = arith.constant 0 : i32
    %c0_i32_1 = arith.constant 0 : i32
    return %c0_i32, %c0_i32_0 : i32, i32
  }
  func.func @transform_5(%arg0: i32) -> (i32, i32) {
    %c0_i32 = arith.constant 0 : i32
    %c0_i32_0 = arith.constant 0 : i32
    %c0_i32_1 = arith.constant 0 : i32
    return %c0_i32, %c0_i32_0 : i32, i32
  }
  func.func @transform_6(%arg0: i32) -> (i32, i32) {
    %c0_i32 = arith.constant 0 : i32
    %c0_i32_0 = arith.constant 0 : i32
    %c0_i32_1 = arith.constant 0 : i32
    return %c0_i32, %c0_i32_0 : i32, i32
  }
  func.func @transform_7(%arg0: i32) -> (i32, i32) {
    %c0_i32 = arith.constant 0 : i32
    %c0_i32_0 = arith.constant 0 : i32
    return %arg0, %c0_i32 : i32, i32
  }
}

</mosaic_0001>

<bundles_post_ra>
// kernel: dqn_forward.1
= control target key start
LH: loop header
LB: loop body
LE: loop exit
PB: predicated region body
PF: predicated region fallthrough
CT: control target
= control target key end

     0   :  { %s963_s24 = smov 0   ;;  %s1112_s0 = inlined_call_operand.vmem [shape: f32[64,32], index: 0, kind: input, shape index: {}]   ;;  %s1113_s1 = inlined_call_operand.vmem [shape: f32[32,128], index: 1, kind: input, shape index: {}]   ;;  %s1114_s2 = inlined_call_operand.vmem [shape: f32[1,128], index: 2, kind: input, shape index: {}]   ;;  %s1115_s3 = inlined_call_operand.vmem [shape: f32[128,128], index: 3, kind: input, shape index: {}]   ;;  %s1116_s4 = inlined_call_operand.vmem [shape: f32[1,128], index: 4, kind: input, shape index: {}]   ;;  %s1117_s5 = inlined_call_operand.vmem [shape: f32[128,32], index: 5, kind: input, shape index: {}]   ;;  %s1118_s6 = inlined_call_operand.vmem [shape: f32[1,32], index: 6, kind: input, shape index: {}]   ;;  %s1119_s7 = inlined_call_operand.vmem [shape: f32[64,32], index: 7, kind: output, shape index: {}]  }
   0x1 LB: > { %s679_s25 = sadd.s32 4294967295, %s921_s24   ;;  %p683_p0 = scmp.ge.s32.totalorder %s921_s24, 1  ;;  %s921_s24 = sphi %s963_s24, %s17_s24  }
   0x2   : > { %p238_p1 = scmp.lt.s32.totalorder %s921_s24, 3 }
   0x4   : > { %p239_p2 = pnand %p683_p0, %p238_p1 }
   0x5   : > { %v286_v0 = vld [vmem:[%s1113_s1] sm:$0xff] (!%p239_p2)  ;;  %v287_v1 = vld [vmem:[%s1113_s1 + $0x8] sm:$0xff] (!%p239_p2)  ;;  %v288_v2 = vld [vmem:[%s1113_s1 + $0x10] sm:$0xff] (!%p239_p2)  ;;  %s684_s9 = sshll.u32 (!%p239_p2), %s679_s25, 2  ;;  %vm297_vm0 = vcmask (!%p239_p2), 261120  }
   0x6   : > { %242 = sbr.rel (%p239_p2) target bundleno = 674 (0x2a2), region = 48  ;;  %v835_v3 = vpack.c.bf16 (!%p239_p2), %v287_v1, %v286_v0  ;;  %v289_v4 = vld [vmem:[%s1113_s1 + $0x18] sm:$0xff] (!%p239_p2)  ;;  %p271_p3 = scmp.lt.s32.totalorder (!%p239_p2), %s684_s9, 7  ;;  %v399_v5 = vld [vmem:[%s1115_s3] sm:$0xff] (!%p239_p2)  ;;  %v400_v6 = vld [vmem:[%s1115_s3 + $0x8] sm:$0xff] (!%p239_p2) }
   0x7   : > { %v839_v7 = vpack.c.bf16 (!%p239_p2), %v289_v4, %v288_v2  ;;  %v843_v8 = vpack.c.bf16 (!%p239_p2), %v400_v6, %v399_v5  ;;  %v401_v9 = vld [vmem:[%s1115_s3 + $0x10] sm:$0xff] (!%p239_p2)  ;;  %v402_v10 = vld [vmem:[%s1115_s3 + $0x18] sm:$0xff] (!%p239_p2)  ;;  %v403_v12 = vld [vmem:[%s1115_s3 + $0x20] sm:$0xff] (!%p239_p2) }
   0x8   : > { %836 = vmatprep.subr.bf16.mxu0 (!%p239_p2), %v835_v3  ;;  %v847_v11 = vpack.c.bf16 (!%p239_p2), %v402_v10, %v401_v9  ;;  %v404_v13 = vld [vmem:[%s1115_s3 + $0x28] sm:$0xff] (!%p239_p2)  ;;  %v405_v16 = vld [vmem:[%s1115_s3 + $0x30] sm:$0xff] (!%p239_p2)  ;;  %v406_v17 = vld [vmem:[%s1115_s3 + $0x38] sm:$0xff] (!%p239_p2) }
   0x9   : > { %838 = vmatpush3.bf16.msra.mxu0 (!%p239_p2), %v835_v3  ;;  %844 = vmatprep.subr.bf16.mxu1 (!%p239_p2), %v843_v8  ;;  %v851_v14 = vpack.c.bf16 (!%p239_p2), %v404_v13, %v403_v12  ;;  %v855_v20 = vpack.c.bf16 (!%p239_p2), %v406_v17, %v405_v16  ;;  %v407_v21 = vld [vmem:[%s1115_s3 + $0x40] sm:$0xff] (!%p239_p2)  ;;  %v408_v22 = vld [vmem:[%s1115_s3 + $0x48] sm:$0xff] (!%p239_p2)  ;;  %v409_v25 = vld [vmem:[%s1115_s3 + $0x50] sm:$0xff] (!%p239_p2) }
   0xa   : > { %840 = vmatprep.subr.bf16.mxu0 (!%p239_p2), %v839_v7  ;;  %846 = vmatpush3.bf16.msra.mxu1 (!%p239_p2), %v843_v8  ;;  %v859_v24 = vpack.c.bf16 (!%p239_p2), %v408_v22, %v407_v21  ;;  %v410_v26 = vld [vmem:[%s1115_s3 + $0x58] sm:$0xff] (!%p239_p2)  ;;  %v411_v28 = vld [vmem:[%s1115_s3 + $0x60] sm:$0xff] (!%p239_p2)  ;;  %v412_v29 = vld [vmem:[%s1115_s3 + $0x68] sm:$0xff] (!%p239_p2) }
   0xb   : > { %848 = vmatprep.subr.bf16.mxu1 (!%p239_p2), %v847_v11  ;;  %v863_v27 = vpack.c.bf16 (!%p239_p2), %v410_v26, %v409_v25  ;;  %v867_v30 = vpack.c.bf16 (!%p239_p2), %v412_v29, %v411_v28  ;;  %v413_v31 = vld [vmem:[%s1115_s3 + $0x70] sm:$0xff] (!%p239_p2)  ;;  %v414_v32 = vld [vmem:[%s1115_s3 + $0x78] sm:$0xff] (!%p239_p2)  ;;  %v511_v34 = vld [vmem:[%s1117_s5] sm:$0xff] (!%p239_p2) }
   0xc   : > { %v871_v33 = vpack.c.bf16 (!%p239_p2), %v414_v32, %v413_v31  ;;  %v512_v35 = vld [vmem:[%s1117_s5 + $0x8] sm:$0xff] (!%p239_p2)  ;;  %v513_v36 = vld [vmem:[%s1117_s5 + $0x10] sm:$0xff] (!%p239_p2)  ;;  %v514_v38 = vld [vmem:[%s1117_s5 + $0x18] sm:$0xff] (!%p239_p2) }
   0xd   : > { %s1121_s9 = smov (!%p271_p3, %s684_s9), 7  ;;  %842 = vmatpush3.bf16.msra.mxu0 %v839_v7  ;;  %v875_v37 = vpack.c.bf16 %v512_v35, %v511_v34  ;;  %v879_v39 = vpack.c.bf16 %v514_v38, %v513_v36  ;;  %v515_v40 = vld [vmem:[%s1117_s5 + $0x20] sm:$0xff]  ;;  %v516_v41 = vld [vmem:[%s1117_s5 + $0x28] sm:$0xff]  ;;  %v517_v43 = vld [vmem:[%s1117_s5 + $0x30] sm:$0xff] }
   0xe   : > { %s685_s25 = sshll.u32 %s1121_s9, 3  ;;  %850 = vmatpush3.bf16.msra.mxu1 %v847_v11  ;;  %v883_v42 = vpack.c.bf16 %v516_v41, %v515_v40  ;;  %v518_v44 = vld [vmem:[%s1117_s5 + $0x38] sm:$0xff]  ;;  %v519_v46 = vld [vmem:[%s1117_s5 + $0x40] sm:$0xff]  ;;  %v520_v47 = vld [vmem:[%s1117_s5 + $0x48] sm:$0xff] }
   0xf   : > { %s274_s28 = scalar_lea.vmem %s1112_s0, %s685_s25  ;;  %852 = vmatprep.subr.bf16.mxu1 %v851_v14  ;;  %876 = vmatprep.subr.bf16.mxu0 %v875_v37  ;;  %v887_v45 = vpack.c.bf16 %v518_v44, %v517_v43  ;;  %v891_v48 = vpack.c.bf16 %v520_v47, %v519_v46  ;;  %v521_v49 = vld [vmem:[%s1117_s5 + $0x50] sm:$0xff]  ;;  %v522_v50 = vld [vmem:[%s1117_s5 + $0x58] sm:$0xff]  ;;  %v523_v52 = vld [vmem:[%s1117_s5 + $0x60] sm:$0xff]  ;;  %s280_s29 = scalar_lea.vmem %s1119_s7, %s685_s25 }
  0x10   : > { %v282_v15 = vld [vmem:[%s274_s28] sm:$0xff]  ;;  %v283_v18 = vld [vmem:[%s274_s28 + $0x8] sm:$0xff]  ;;  %v284_v19 = vld [vmem:[%s274_s28 + $0x10] sm:$0xff]  ;;  %v895_v51 = vpack.c.bf16 %v522_v50, %v521_v49 }
  0x11   : > { %753 = vmatprep.mubr.msk.f32.mxu0 %vm297_vm0, %v282_v15  ;;  %v285_v23 = vld [vmem:[%s274_s28 + $0x18] sm:$0xff]  ;;  %v524_v53 = vld [vmem:[%s1117_s5 + $0x68] sm:$0xff]  ;;  %v688_v55 = vld [vmem:[%s1114_s2] ss:$0 sm:$0xff] }
  0x12   : > { %754 = vmatmul.mubr.msk.f32.vlgmr.msra.gmra.mrb[0].mxu0 %vm297_vm0, %v283_v18  ;;  %854 = vmatpush3.bf16.msra.mxu1 %v851_v14  ;;  %v899_v54 = vpack.c.bf16 %v524_v53, %v523_v52  ;;  %v525_v4 = vld [vmem:[%s1117_s5 + $0x70] sm:$0xff]  ;;  %v526_v5 = vld [vmem:[%s1117_s5 + $0x78] sm:$0xff]  ;;  %v693_v7 = vld [vmem:[%s1116_s4] ss:$0 sm:$0xff] }
  0x13   : > { %756 = vmatprep.mubr.msk.f32.mxu0 %vm297_vm0, %v284_v19  ;;  %856 = vmatprep.subr.bf16.mxu1 %v855_v20  ;;  %v903_v6 = vpack.c.bf16 %v526_v5, %v525_v4 }
  0x14   : > { %878 = vmatpush3.bf16.msra.mxu0 %v875_v37 }
  0x15   : > { %880 = vmatprep.subr.bf16.mxu0 %v879_v39 }
  0x16   : > { %757 = vmatmul.mubr.msk.f32.gmra.mrb[2].mxu0 %vm297_vm0, %v285_v23  ;;  %858 = vmatpush3.bf16.msra.mxu1 %v855_v20  ;;  %v694_v20 = vld [vmem:[%s1118_s6] ss:$0 sm:$0xff] }
  0x17   : > { %860 = vmatprep.subr.bf16.mxu1 %v859_v24 }
  0x18   : > { %882 = vmatpush3.bf16.msra.mxu0 %v879_v39 }
  0x19   : > { %884 = vmatprep.subr.bf16.mxu0 %v883_v42 }
  0x1a   : > { %862 = vmatpush3.bf16.msra.mxu1 %v859_v24 }
  0x1b   : > { %864 = vmatprep.subr.bf16.mxu1 %v863_v27 }
  0x1c   : > { %886 = vmatpush3.bf16.msra.mxu0 %v883_v42 }
  0x1d   : > { %888 = vmatprep.subr.bf16.mxu0 %v887_v45 }
  0x1e   : > { %866 = vmatpush3.bf16.msra.mxu1 %v863_v27 }
  0x1f   : > { %868 = vmatprep.subr.bf16.mxu1 %v867_v30 }
  0x20   : > { %890 = vmatpush3.bf16.msra.mxu0 %v887_v45 }
  0x21   : > { %892 = vmatprep.subr.bf16.mxu0 %v891_v48 }
  0x22   : > { %870 = vmatpush3.bf16.msra.mxu1 %v867_v30 }
  0x23   : > { %872 = vmatprep.subr.bf16.mxu1 %v871_v33 }
  0x24   : > { %894 = vmatpush3.bf16.msra.mxu0 %v891_v48 }
  0x25   : > { %896 = vmatprep.subr.bf16.mxu0 %v895_v51 }
  0x26   : > { %874 = vmatpush3.bf16.msra.mxu1 %v871_v33 }
  0x28   : > { %898 = vmatpush3.bf16.msra.mxu0 %v895_v51 }
  0x29   : > { %900 = vmatprep.subr.bf16.mxu0 %v899_v54 }
  0x2c   : > { %902 = vmatpush3.bf16.msra.mxu0 %v899_v54 }
  0x2d   : > { %904 = vmatprep.subr.bf16.mxu0 %v903_v6 }
  0x30   : > { %906 = vmatpush3.bf16.msra.mxu0 %v903_v6 }
  0xe5   : > { %v755_v56 = vpop.f32.mrb[0].mxu0 }
  0xe6   : > { %v382_v57 = vadd.f32 %v755_v56, %v688_v55  ;;  %v376_v58 = vpop.f32.mrb[1].mxu0 }
  0xe7   : > { %v377_v59 = vadd.f32 %v688_v55, %v376_v58 }
  0xe8   : > { %v396_v62 = vmax.f32 %v382_v57, 0.0 }
  0xe9   : > { %v758_v60 = vpop.f32.mrb[2].mxu0  ;;  %v395_v61 = vmax.f32 %v377_v59, 0.0 }
  0xea   : > { %v392_v63 = vadd.f32 %v758_v60, %v688_v55  ;;  %v386_v0 = vpop.f32.mrb[3].mxu0 }
  0xeb   : > { %v387_v1 = vadd.f32 %v688_v55, %v386_v0  ;;  %791 = vmatprep.mubr.f32.mxu1 %v395_v61 }
  0xec   : > { %792 = vmatmul.mubr.f32.vlgmr.msra.gmra.mrb[0].mxu1 %v396_v62  ;;  %v398_v3 = vmax.f32 %v392_v63, 0.0 }
  0xed   : > { %v397_v2 = vmax.f32 %v387_v1, 0.0 }
  0xef   : > { %794 = vmatprep.mubr.f32.mxu1 %v397_v2 }
  0xf0   : > { %795 = vmatmul.mubr.f32.gmra.mrb[2].mxu1 %v398_v3 }
 0x1bf   : > { %v793_v8 = vpop.f32.mrb[0].mxu1 }
 0x1c0   : > { %v494_v9 = vadd.f32 %v793_v8, %v693_v7  ;;  %v488_v10 = vpop.f32.mrb[1].mxu1 }
 0x1c1   : > { %v489_v11 = vadd.f32 %v693_v7, %v488_v10 }
 0x1c2   : > { %v508_v14 = vmax.f32 %v494_v9, 0.0 }
 0x1c3   : > { %v507_v12 = vmax.f32 %v489_v11, 0.0  ;;  %v796_v13 = vpop.f32.mrb[2].mxu1 }
 0x1c4   : > { %v504_v15 = vadd.f32 %v796_v13, %v693_v7  ;;  %v498_v16 = vpop.f32.mrb[3].mxu1 }
 0x1c5   : > { %v499_v17 = vadd.f32 %v693_v7, %v498_v16  ;;  %829 = vmatprep.mubr.f32.mxu0 %v507_v12 }
 0x1c6   : > { %830 = vmatmul.mubr.f32.vlgmr.msra.gmra.mrb[4].mxu0 %v508_v14  ;;  %v510_v19 = vmax.f32 %v504_v15, 0.0 }
 0x1c7   : > { %v509_v18 = vmax.f32 %v499_v17, 0.0 }
 0x1c9   : > { %832 = vmatprep.mubr.f32.mxu0 %v509_v18 }
 0x1ca   : > { %833 = vmatmul.mubr.f32.gmra.mrb[6].mxu0 %v510_v19 }
 0x299   : > { %v831_v21 = vpop.f32.mrb[4].mxu0 }
 0x29a   : > { %v600_v22 = vpop.f32.mrb[5].mxu0  ;;  %v606_v24 = vadd.f32 %v831_v21, %v694_v20 }
 0x29b   : > { %v601_v23 = vadd.f32 %v694_v20, %v600_v22 }
 0x29c   : > { %620 = vst.msk [vmem:[%s280_s29 + $0x8] sm:$0xff] %vm297_vm0, %v606_v24 }
 0x29d   : > { %619 = vst.msk [vmem:[%s280_s29] sm:$0xff] %vm297_vm0, %v601_v23  ;;  %v834_v25 = vpop.f32.mrb[6].mxu0 }
 0x29e   : > { %v610_v26 = vpop.f32.mrb[7].mxu0  ;;  %v616_v28 = vadd.f32 %v834_v25, %v694_v20 }
 0x29f   : > { %v611_v27 = vadd.f32 %v694_v20, %v610_v26 }
 0x2a0   : > { %622 = vst.msk [vmem:[%s280_s29 + $0x18] sm:$0xff] %vm297_vm0, %v616_v28 }
 0x2a1   : > { %621 = vst.msk [vmem:[%s280_s29 + $0x10] sm:$0xff] %vm297_vm0, %v611_v27 }
 0x2a2 PF: > { %s17_s24 = sadd.s32 1, %s921_s24  }
 0x2a3   : > { %p14_p4 = scmp.ge.s32.totalorder %s17_s24, 4  }
 0x2a5   :  { %16 = sbr.rel (!%p14_p4) target bundleno = 1 (0x1), region = 78 }

</bundles_post_ra>
